<compile_context>
chip_gen: v7x
topology: tpu7x:2x2x1
jax: 0.10.0
libtpu: 0.0.40
codegen_flags: <defaults>
</compile_context>

<pallas_src>
import jax
import jax.numpy as jnp
from jax.experimental import pallas as pl
from jax.experimental.pallas import tpu as pltpu


def _round_up(n, m):
    return ((n + m - 1) // m) * m


def _pad_to(a, shape):
    pads = [(0, t - s) for s, t in zip(a.shape, shape)]
    if all(p == (0, 0) for p in pads):
        return a
    return jnp.pad(a, pads)


def resnet_block_kernel(x_ref, w1_ref, b1_ref, w2_ref, b2_ref, o_ref):
    """One (TB, Dp) batch tile of f(x) = x + W2 @ relu(W1 @ x + b1) + b2.

    Weights are in PyTorch (out, in) layout; both dots contract the last dim of
    both operands, so no transpose is materialized anywhere.  All bias / ReLU /
    residual math happens on the f32 accumulator (preferred_element_type=f32).
    """
    x = x_ref[...]
    dn = (((1,), (1,)), ((), ()))  # contract lane dims of lhs and rhs, no batch dims

    h = jax.lax.dot_general(x, w1_ref[...], dn, preferred_element_type=jnp.float32)
    h = jnp.maximum(h + b1_ref[...], 0.0)          # bias + ReLU in f32 on the VPU
    h = h.astype(x.dtype)                          # back to compute dtype for the MXU

    g = jax.lax.dot_general(h, w2_ref[...], dn, preferred_element_type=jnp.float32)
    g = g + b2_ref[...]

    o_ref[...] = (x.astype(jnp.float32) + g).astype(o_ref.dtype)


def resnet_block(x, w1, b1, w2, b2, *, block_b=256, compute_dtype=None):
    """ResNetBlock forward.

    x: (B, D).  w1, w2: (D, D) in PyTorch (out, in) layout.  b1, b2: (D,).
    compute_dtype=jnp.bfloat16 feeds the MXU bf16 inputs (f32 accumulation),
    recommended on v6e/v7x; default keeps the module's f32 semantics exactly.
    """
    B, D = x.shape
    out_dtype = jnp.dtype(x.dtype)
    cdtype = jnp.dtype(compute_dtype) if compute_dtype is not None else out_dtype

    # Lane-dense feature dim (multiple of 128) and sublane-aligned batch tile.
    Dp = _round_up(D, 128)
    TB = max(8, _round_up(min(block_b, B), 8))
    Bp = _round_up(B, TB)
    grid = (Bp // TB,)

    xp = _pad_to(x, (Bp, Dp)).astype(cdtype)
    w1p = _pad_to(w1, (Dp, Dp)).astype(cdtype)
    w2p = _pad_to(w2, (Dp, Dp)).astype(cdtype)
    b1p = _pad_to(b1.reshape(1, D), (1, Dp)).astype(jnp.float32)
    b2p = _pad_to(b2.reshape(1, D), (1, Dp)).astype(jnp.float32)

    # Rough VMEM budget: two resident (Dp, Dp) weights + biases + double-buffered
    # x/out tiles, with headroom, capped under v7x's 64 MiB physical VMEM.
    # TODO(synk): for very large D where both (Dp, Dp) weights no longer fit in
    # VMEM, add a K/N grid axis with an f32 accumulator instead of full-D blocks.
    cs, osz = cdtype.itemsize, out_dtype.itemsize
    vmem_bytes = 2 * Dp * Dp * cs + 2 * Dp * 4 + 2 * TB * Dp * (cs + osz)
    vmem_limit = int(min(max(6 * vmem_bytes, 8 << 20), 60 << 20))

    # In-place residual update: alias the padded activation onto the output when
    # dtypes match -> saves one (Bp, Dp) HBM writeback stream.
    io_alias = {0: 0} if cdtype == out_dtype else {}

    act_spec = pl.BlockSpec((TB, Dp), lambda i: (i, 0))
    w_spec = pl.BlockSpec((Dp, Dp), lambda i: (0, 0))   # grid-invariant -> resident
    b_spec = pl.BlockSpec((1, Dp), lambda i: (0, 0))    # grid-invariant -> resident

    out = pl.pallas_call(
        resnet_block_kernel,
        out_shape=jax.ShapeDtypeStruct((Bp, Dp), out_dtype),
        grid=grid,
        in_specs=[act_spec, w_spec, b_spec, w_spec, b_spec],
        out_specs=act_spec,
        input_output_aliases=io_alias,
        compiler_params=pltpu.CompilerParams(
            dimension_semantics=("parallel",),   # megacore / v7x dual-TC sharding
            vmem_limit_bytes=vmem_limit,
        ),
    )(xp, w1p, b1p, w2p, b2p)

    return out[:B, :D]


def resnet_block_ref(x, w1, b1, w2, b2):
    h = jnp.maximum(x @ w1.T + b1, 0.0)
    return x + (h @ w2.T + b2)


if __name__ == "__main__":
    dim, batch = 32, 48  # ResNetBlock(dim=32, "relu"); batch spans 2 grid tiles

    key = jax.random.PRNGKey(0)
    kx, k1, kb1, k2, kb2 = jax.random.split(key, 5)

    x = jax.random.normal(kx, (batch, dim), dtype=jnp.float32)
    bound = 1.0 / (dim ** 0.5)  # PyTorch Linear init: U(-1/sqrt(in), 1/sqrt(in))
    w1 = jax.random.uniform(k1, (dim, dim), jnp.float32, -bound, bound)
    b1 = jax.random.uniform(kb1, (dim,), jnp.float32, -bound, bound)
    w2 = jax.random.uniform(k2, (dim, dim), jnp.float32, -bound, bound)
    b2 = jax.random.uniform(kb2, (dim,), jnp.float32, -bound, bound)

    ref = resnet_block_ref(x, w1, b1, w2, b2)

    fwd = jax.jit(resnet_block, static_argnames=("block_b", "compute_dtype"))

    # f32 path (strict numerics, v5e-friendly epilogue).
    out = jax.block_until_ready(fwd(x, w1, b1, w2, b2, block_b=32))
    assert out.shape == (batch, dim)
    assert jnp.allclose(out, ref, atol=1e-4, rtol=1e-4), float(
        jnp.max(jnp.abs(out - ref)))

    # bf16 weights/activations with f32 accumulation (v6e/v7x MXU-native path).
    out_bf16 = jax.block_until_ready(
        fwd(x, w1, b1, w2, b2, block_b=32, compute_dtype=jnp.bfloat16))
    assert out_bf16.shape == (batch, dim)
    assert jnp.allclose(out_bf16, ref, atol=1e-1, rtol=1e-1), float(
        jnp.max(jnp.abs(out_bf16 - ref)))

    print("KERNEL_OK")
</pallas_src>

<mosaic_0001>
module attributes {stable_mosaic.version = 11 : i64} {
  func.func @resnet_block_kernel(%arg0: i32, %arg1: memref<32x128xf32, #tpu.memory_space<vmem>>, %arg2: memref<128x128xf32, #tpu.memory_space<vmem>>, %arg3: memref<1x128xf32, #tpu.memory_space<vmem>>, %arg4: memref<128x128xf32, #tpu.memory_space<vmem>>, %arg5: memref<1x128xf32, #tpu.memory_space<vmem>>, %arg6: memref<32x128xf32, #tpu.memory_space<vmem>>) attributes {dimension_semantics = [#tpu.dimension_semantics<parallel>], iteration_bounds = array<i64: 2>, scalar_prefetch = 0 : i64, scratch_operands = 0 : i64, tpu.core_type = #tpu.core_type<tc>, window_params = [{transform_indices = @transform_0, window_bounds = array<i64: 32, 128>}, {pipeline_mode = #tpu.pipeline_mode<synchronous>, transform_indices = @transform_1, window_bounds = array<i64: 128, 128>}, {pipeline_mode = #tpu.pipeline_mode<synchronous>, transform_indices = @transform_2, window_bounds = array<i64: 1, 128>}, {pipeline_mode = #tpu.pipeline_mode<synchronous>, transform_indices = @transform_3, window_bounds = array<i64: 128, 128>}, {pipeline_mode = #tpu.pipeline_mode<synchronous>, transform_indices = @transform_4, window_bounds = array<i64: 1, 128>}, {transform_indices = @transform_5, window_bounds = array<i64: 32, 128>}]} {
    %c0 = arith.constant 0 : index
    %c0_0 = arith.constant 0 : index
    %0 = vector.load %arg1[%c0, %c0_0] : memref<32x128xf32, #tpu.memory_space<vmem>>, vector<32x128xf32>
    %c0_1 = arith.constant 0 : index
    %c0_2 = arith.constant 0 : index
    %1 = vector.load %arg2[%c0_1, %c0_2] : memref<128x128xf32, #tpu.memory_space<vmem>>, vector<128x128xf32>
    %cst = arith.constant dense<0.000000e+00> : vector<32x128xf32>
    %2 = tpu.matmul %0, %1, %cst {dimension_numbers = #tpu.dot_dimension_numbers<[1], [1], [0], [0], [0, 0, 1, 0], [], []>} : vector<32x128xf32>, vector<128x128xf32>, vector<32x128xf32> -> vector<32x128xf32>
    %c0_3 = arith.constant 0 : index
    %c0_4 = arith.constant 0 : index
    %3 = vector.load %arg3[%c0_3, %c0_4] : memref<1x128xf32, #tpu.memory_space<vmem>>, vector<1x128xf32>
    %4 = vector.broadcast %3 : vector<1x128xf32> to vector<32x128xf32>
    %5 = arith.addf %2, %4 : vector<32x128xf32>
    %cst_5 = arith.constant 0.000000e+00 : f32
    %6 = vector.broadcast %cst_5 : f32 to vector<32x128xf32>
    %7 = arith.maximumf %5, %6 : vector<32x128xf32>
    %c0_6 = arith.constant 0 : index
    %c0_7 = arith.constant 0 : index
    %8 = vector.load %arg4[%c0_6, %c0_7] : memref<128x128xf32, #tpu.memory_space<vmem>>, vector<128x128xf32>
    %cst_8 = arith.constant dense<0.000000e+00> : vector<32x128xf32>
    %9 = tpu.matmul %7, %8, %cst_8 {dimension_numbers = #tpu.dot_dimension_numbers<[1], [1], [0], [0], [0, 0, 1, 0], [], []>} : vector<32x128xf32>, vector<128x128xf32>, vector<32x128xf32> -> vector<32x128xf32>
    %c0_9 = arith.constant 0 : index
    %c0_10 = arith.constant 0 : index
    %10 = vector.load %arg5[%c0_9, %c0_10] : memref<1x128xf32, #tpu.memory_space<vmem>>, vector<1x128xf32>
    %11 = vector.broadcast %10 : vector<1x128xf32> to vector<32x128xf32>
    %12 = arith.addf %9, %11 : vector<32x128xf32>
    %13 = arith.addf %0, %12 : vector<32x128xf32>
    %c0_11 = arith.constant 0 : index
    %c0_12 = arith.constant 0 : index
    %14 = vector.load %arg6[%c0_11, %c0_12] : memref<32x128xf32, #tpu.memory_space<vmem>>, vector<32x128xf32>
    tpu.vector_store %arg6[%c0_11, %c0_12], %13 {strides = array<i32>} : memref<32x128xf32, #tpu.memory_space<vmem>>, vector<32x128xf32>,
    return
  }
  func.func @transform_0(%arg0: i32) -> (i32, i32) {
    %c0_i32 = arith.constant 0 : i32
    %c0_i32_0 = arith.constant 0 : i32
    return %arg0, %c0_i32 : i32, i32
  }
  func.func @transform_1(%arg0: i32) -> (i32, i32) {
    %c0_i32 = arith.constant 0 : i32
    %c0_i32_0 = arith.constant 0 : i32
    %c0_i32_1 = arith.constant 0 : i32
    return %c0_i32, %c0_i32_0 : i32, i32
  }
  func.func @transform_2(%arg0: i32) -> (i32, i32) {
    %c0_i32 = arith.constant 0 : i32
    %c0_i32_0 = arith.constant 0 : i32
    %c0_i32_1 = arith.constant 0 : i32
    return %c0_i32, %c0_i32_0 : i32, i32
  }
  func.func @transform_3(%arg0: i32) -> (i32, i32) {
    %c0_i32 = arith.constant 0 : i32
    %c0_i32_0 = arith.constant 0 : i32
    %c0_i32_1 = arith.constant 0 : i32
    return %c0_i32, %c0_i32_0 : i32, i32
  }
  func.func @transform_4(%arg0: i32) -> (i32, i32) {
    %c0_i32 = arith.constant 0 : i32
    %c0_i32_0 = arith.constant 0 : i32
    %c0_i32_1 = arith.constant 0 : i32
    return %c0_i32, %c0_i32_0 : i32, i32
  }
  func.func @transform_5(%arg0: i32) -> (i32, i32) {
    %c0_i32 = arith.constant 0 : i32
    %c0_i32_0 = arith.constant 0 : i32
    return %arg0, %c0_i32 : i32, i32
  }
}

</mosaic_0001>

<bundles_post_ra>
// kernel: resnet_block.1
= control target key start
LH: loop header
LB: loop body
LE: loop exit
PB: predicated region body
PF: predicated region fallthrough
CT: control target
= control target key end

     0   :  { %s755_s18 = smov 0   ;;  %s891_s0 = inlined_call_operand.vmem [shape: f32[64,128], index: 0, kind: input, shape index: {}, may-alias: {0,5}]   ;;  %s892_s1 = inlined_call_operand.vmem [shape: f32[128,128], index: 1, kind: input, shape index: {}]   ;;  %s893_s2 = inlined_call_operand.vmem [shape: f32[1,128], index: 2, kind: input, shape index: {}]   ;;  %s894_s3 = inlined_call_operand.vmem [shape: f32[128,128], index: 3, kind: input, shape index: {}]   ;;  %s895_s4 = inlined_call_operand.vmem [shape: f32[1,128], index: 4, kind: input, shape index: {}]   ;;  %s896_s5 = inlined_call_operand.vmem [shape: f32[64,128], index: 5, kind: output, shape index: {}, may-alias: {0,5}]  }
   0x1 LB: > { %s516_s19 = sadd.s32 4294967295, %s723_s18   ;;  %p520_p0 = scmp.ge.s32.totalorder %s723_s18, 1  ;;  %s723_s18 = sphi %s755_s18, %s15_s18  }
   0x2   : > { %p188_p1 = scmp.lt.s32.totalorder %s723_s18, 3 }
   0x4   : > { %p189_p2 = pnand %p520_p0, %p188_p1 }
   0x5   : > { %v232_v0 = vld [vmem:[%s892_s1] sm:$0xff] (!%p189_p2)  ;;  %v233_v1 = vld [vmem:[%s892_s1 + $0x8] sm:$0xff] (!%p189_p2)  ;;  %v234_v2 = vld [vmem:[%s892_s1 + $0x10] sm:$0xff] (!%p189_p2)  ;;  %s521_s26 = sshll.u32 (!%p189_p2), %s516_s19, 2 }
   0x6   : > { %192 = sbr.rel (%p189_p2) target bundleno = 512 (0x200), region = 40  ;;  %v645_v3 = vpack.c.bf16 (!%p189_p2), %v233_v1, %v232_v0  ;;  %v235_v4 = vld [vmem:[%s892_s1 + $0x18] sm:$0xff] (!%p189_p2)  ;;  %p217_p3 = scmp.lt.s32.totalorder (!%p189_p2), %s521_s26, 7  ;;  %v236_v6 = vld [vmem:[%s892_s1 + $0x20] sm:$0xff] (!%p189_p2)  ;;  %v345_v8 = vld [vmem:[%s894_s3 + $0x8] sm:$0xff] (!%p189_p2) }
   0x7   : > { %v649_v5 = vpack.c.bf16 (!%p189_p2), %v235_v4, %v234_v2  ;;  %v344_v7 = vld [vmem:[%s894_s3] sm:$0xff] (!%p189_p2)  ;;  %v237_v9 = vld [vmem:[%s892_s1 + $0x28] sm:$0xff] (!%p189_p2)  ;;  %v346_v11 = vld [vmem:[%s894_s3 + $0x10] sm:$0xff] (!%p189_p2) }
   0x8   : > { %646 = vmatprep.subr.bf16.mxu0 (!%p189_p2), %v645_v3  ;;  %v677_v10 = vpack.c.bf16 (!%p189_p2), %v345_v8, %v344_v7  ;;  %v347_v12 = vld [vmem:[%s894_s3 + $0x18] sm:$0xff] (!%p189_p2)  ;;  %v653_v15 = vpack.c.bf16 (!%p189_p2), %v237_v9, %v236_v6  ;;  %v348_v16 = vld [vmem:[%s894_s3 + $0x20] sm:$0xff] (!%p189_p2)  ;;  %v349_v17 = vld [vmem:[%s894_s3 + $0x28] sm:$0xff] (!%p189_p2) }
   0x9   : > { %648 = vmatpush3.bf16.xpose.msra.mxu0 (!%p189_p2), %v645_v3  ;;  %v681_v14 = vpack.c.bf16 (!%p189_p2), %v347_v12, %v346_v11  ;;  %v238_v18 = vld [vmem:[%s892_s1 + $0x30] sm:$0xff] (!%p189_p2)  ;;  %v239_v19 = vld [vmem:[%s892_s1 + $0x38] sm:$0xff] (!%p189_p2)  ;;  %v685_v20 = vpack.c.bf16 (!%p189_p2), %v349_v17, %v348_v16  ;;  %v240_v24 = vld [vmem:[%s892_s1 + $0x40] sm:$0xff] (!%p189_p2) }
   0xa   : > { %650 = vmatprep.subr.bf16.mxu0 (!%p189_p2), %v649_v5  ;;  %678 = vmatprep.subr.bf16.mxu1 (!%p189_p2), %v677_v10  ;;  %v657_v21 = vpack.c.bf16 (!%p189_p2), %v239_v19, %v238_v18  ;;  %v350_v22 = vld [vmem:[%s894_s3 + $0x30] sm:$0xff] (!%p189_p2)  ;;  %v351_v23 = vld [vmem:[%s894_s3 + $0x38] sm:$0xff] (!%p189_p2)  ;;  %v241_v25 = vld [vmem:[%s892_s1 + $0x48] sm:$0xff] (!%p189_p2) }
   0xb   : > { %680 = vmatpush3.bf16.xpose.msra.mxu1 (!%p189_p2), %v677_v10  ;;  %v689_v26 = vpack.c.bf16 (!%p189_p2), %v351_v23, %v350_v22  ;;  %v661_v27 = vpack.c.bf16 (!%p189_p2), %v241_v25, %v240_v24  ;;  %v352_v28 = vld [vmem:[%s894_s3 + $0x40] sm:$0xff] (!%p189_p2)  ;;  %v353_v29 = vld [vmem:[%s894_s3 + $0x48] sm:$0xff] (!%p189_p2)  ;;  %v242_v30 = vld [vmem:[%s892_s1 + $0x50] sm:$0xff] (!%p189_p2) }
   0xc   : > { %682 = vmatprep.subr.bf16.mxu1 (!%p189_p2), %v681_v14  ;;  %v243_v31 = vld [vmem:[%s892_s1 + $0x58] sm:$0xff] (!%p189_p2)  ;;  %v693_v32 = vpack.c.bf16 (!%p189_p2), %v353_v29, %v352_v28  ;;  %v354_v34 = vld [vmem:[%s894_s3 + $0x50] sm:$0xff] (!%p189_p2)  ;;  %v244_v36 = vld [vmem:[%s892_s1 + $0x60] sm:$0xff] (!%p189_p2) }
   0xd   : > { %s898_s26 = smov (!%p217_p3, %s521_s26), 7  ;;  %v665_v33 = vpack.c.bf16 %v243_v31, %v242_v30  ;;  %v355_v35 = vld [vmem:[%s894_s3 + $0x58] sm:$0xff]  ;;  %v245_v37 = vld [vmem:[%s892_s1 + $0x68] sm:$0xff]  ;;  %v356_v40 = vld [vmem:[%s894_s3 + $0x60] sm:$0xff] }
   0xe   : > { %s522_s6 = sshll.u32 %s898_s26, 3  ;;  %v697_v38 = vpack.c.bf16 %v355_v35, %v354_v34  ;;  %v669_v39 = vpack.c.bf16 %v245_v37, %v244_v36  ;;  %v357_v41 = vld [vmem:[%s894_s3 + $0x68] sm:$0xff]  ;;  %v246_v42 = vld [vmem:[%s892_s1 + $0x70] sm:$0xff]  ;;  %v247_v43 = vld [vmem:[%s892_s1 + $0x78] sm:$0xff] }
   0xf   : > { %s795_s15 = scalar_lea.vmem %s891_s0, %s522_s6  ;;  %v701_v44 = vpack.c.bf16 %v357_v41, %v356_v40  ;;  %v673_v45 = vpack.c.bf16 %v247_v43, %v246_v42  ;;  %v358_v46 = vld [vmem:[%s894_s3 + $0x70] sm:$0xff]  ;;  %v359_v47 = vld [vmem:[%s894_s3 + $0x78] sm:$0xff]  ;;  %v525_v52 = vld [vmem:[%s893_s2] ss:$0 sm:$0xff]  ;;  %s226_s29 = scalar_lea.vmem %s896_s5, %s522_s6 }
  0x10   : > { %v804_v13 = vld [vmem:[%s795_s15] sm:$0xff]  ;;  %v705_v48 = vpack.c.bf16 %v359_v47, %v358_v46  ;;  %v229_v49 = vld [vmem:[%s795_s15 + $0x8] sm:$0xff]  ;;  %v230_v50 = vld [vmem:[%s795_s15 + $0x10] sm:$0xff] }
  0x11   : > { %601 = vmatprep.mubr.f32.mxu0 %v804_v13  ;;  %652 = vmatpush3.bf16.xpose.msra.mxu0 %v649_v5  ;;  %v231_v51 = vld [vmem:[%s795_s15 + $0x18] sm:$0xff]  ;;  %v526_v1 = vld [vmem:[%s895_s4] ss:$0 sm:$0xff] }
  0x12   : > { %654 = vmatprep.subr.bf16.mxu0 %v653_v15 }
  0x13   : > { %684 = vmatpush3.bf16.xpose.msra.mxu1 %v681_v14 }
  0x14   : > { %686 = vmatprep.subr.bf16.mxu1 %v685_v20 }
  0x19   : > { %656 = vmatpush3.bf16.xpose.msra.mxu0 %v653_v15 }
  0x1a   : > { %658 = vmatprep.subr.bf16.mxu0 %v657_v21 }
  0x1b   : > { %688 = vmatpush3.bf16.xpose.msra.mxu1 %v685_v20 }
  0x1c   : > { %690 = vmatprep.subr.bf16.mxu1 %v689_v26 }
  0x21   : > { %660 = vmatpush3.bf16.xpose.msra.mxu0 %v657_v21 }
  0x22   : > { %662 = vmatprep.subr.bf16.mxu0 %v661_v27 }
  0x23   : > { %692 = vmatpush3.bf16.xpose.msra.mxu1 %v689_v26 }
  0x24   : > { %694 = vmatprep.subr.bf16.mxu1 %v693_v32 }
  0x29   : > { %664 = vmatpush3.bf16.xpose.msra.mxu0 %v661_v27 }
  0x2a   : > { %666 = vmatprep.subr.bf16.mxu0 %v665_v33 }
  0x2b   : > { %696 = vmatpush3.bf16.xpose.msra.mxu1 %v693_v32 }
  0x2c   : > { %698 = vmatprep.subr.bf16.mxu1 %v697_v38 }
  0x31   : > { %668 = vmatpush3.bf16.xpose.msra.mxu0 %v665_v33 }
  0x32   : > { %670 = vmatprep.subr.bf16.mxu0 %v669_v39 }
  0x33   : > { %700 = vmatpush3.bf16.xpose.msra.mxu1 %v697_v38 }
  0x34   : > { %702 = vmatprep.subr.bf16.mxu1 %v701_v44 }
  0x39   : > { %672 = vmatpush3.bf16.xpose.msra.mxu0 %v669_v39 }
  0x3a   : > { %674 = vmatprep.subr.bf16.mxu0 %v673_v45 }
  0x3b   : > { %704 = vmatpush3.bf16.xpose.msra.mxu1 %v701_v44 }
  0x3c   : > { %706 = vmatprep.subr.bf16.mxu1 %v705_v48 }
  0x41   : > { %676 = vmatpush3.bf16.xpose.msra.mxu0 %v673_v45 }
  0x43   : > { %708 = vmatpush3.bf16.xpose.msra.mxu1 %v705_v48 }
  0x48   : > { %602 = vmatmul.mubr.f32.vlgmr.msra.gmra.mrb[0].mxu0 %v229_v49 }
  0x49   : > { %604 = vmatprep.mubr.f32.mxu0 %v230_v50 }
  0x4c   : > { %605 = vmatmul.mubr.f32.gmra.mrb[2].mxu0 %v231_v51 }
 0x11b   : > { %v603_v53 = vpop.f32.mrb[0].mxu0 }
 0x11c   : > { %v327_v54 = vadd.f32 %v603_v53, %v525_v52  ;;  %v321_v55 = vpop.f32.mrb[1].mxu0 }
 0x11d   : > { %v322_v56 = vadd.f32 %v525_v52, %v321_v55 }
 0x11e   : > { %v341_v59 = vmax.f32 %v327_v54, 0.0 }
 0x11f   : > { %v606_v57 = vpop.f32.mrb[2].mxu0  ;;  %v340_v58 = vmax.f32 %v322_v56, 0.0 }
 0x120   : > { %v337_v60 = vadd.f32 %v606_v57, %v525_v52  ;;  %v331_v61 = vpop.f32.mrb[3].mxu0 }
 0x121   : > { %v332_v62 = vadd.f32 %v525_v52, %v331_v61  ;;  %639 = vmatprep.mubr.f32.mxu1 %v340_v58 }
 0x122   : > { %640 = vmatmul.mubr.f32.vlgmr.msra.gmra.mrb[0].mxu1 %v341_v59  ;;  %v343_v0 = vmax.f32 %v337_v60, 0.0 }
 0x123   : > { %v342_v63 = vmax.f32 %v332_v62, 0.0 }
 0x125   : > { %642 = vmatprep.mubr.f32.mxu1 %v342_v63 }
 0x126   : > { %643 = vmatmul.mubr.f32.gmra.mrb[2].mxu1 %v343_v0 }
 0x1f5   : > { %v641_v2 = vpop.f32.mrb[0].mxu1 }
 0x1f6   : > { %v439_v3 = vadd.f32 %v641_v2, %v526_v1  ;;  %v433_v4 = vpop.f32.mrb[1].mxu1 }
 0x1f7   : > { %v434_v5 = vadd.f32 %v526_v1, %v433_v4 }
 0x1f8   : > { %v453_v8 = vadd.f32 %v439_v3, %v229_v49 }
 0x1f9   : > { %v452_v6 = vadd.f32 %v434_v5, %v804_v13  ;;  %v644_v7 = vpop.f32.mrb[2].mxu1 }
 0x1fa   : > { %v449_v9 = vadd.f32 %v644_v7, %v526_v1  ;;  %v443_v10 = vpop.f32.mrb[3].mxu1  ;;  %457 = vst [vmem:[%s226_s29 + $0x8] sm:$0xff] %v453_v8 }
 0x1fb   : > { %456 = vst [vmem:[%s226_s29] sm:$0xff] %v452_v6  ;;  %v444_v11 = vadd.f32 %v526_v1, %v443_v10 }
 0x1fc   : > { %v455_v14 = vadd.f32 %v449_v9, %v231_v51 }
 0x1fd   : > { %v454_v12 = vadd.f32 %v444_v11, %v230_v50 }
 0x1fe   : > { %459 = vst [vmem:[%s226_s29 + $0x18] sm:$0xff] %v455_v14 }
 0x1ff   : > { %458 = vst [vmem:[%s226_s29 + $0x10] sm:$0xff] %v454_v12 }
 0x200 PF: > { %s15_s18 = sadd.s32 1, %s723_s18  }
 0x201   : > { %p12_p4 = scmp.ge.s32.totalorder %s15_s18, 4  }
 0x203   :  { %14 = sbr.rel (!%p12_p4) target bundleno = 1 (0x1), region = 70 }

</bundles_post_ra>
